<compile_context>
chip_gen: v6e
topology: v6e:2x2x1
jax: 0.10.0
libtpu: 0.0.40
codegen_flags: <defaults>
</compile_context>

<pallas_src>
import functools

import jax
import jax.numpy as jnp
from jax import lax
from jax.experimental import pallas as pl
from jax.experimental.pallas import tpu as pltpu


def _round_up(x, m):
    return ((x + m - 1) // m) * m


def _center_loss_kernel(y_ref, hidden_ref, centers_ref, out_ref, *,
                        batch, tile_b, tiles_per_split):
    """Partial sum of squared distances for one (tile_b, D) batch tile.

    y_ref       : VMEM int32 (tile_b, 1)    labels for this tile
    hidden_ref  : VMEM f32   (tile_b, D)
    centers_ref : VMEM f32   (C, D)         fully resident
    out_ref     : SMEM f32   (1, 1)         partial sum for this core-split
    """
    c = pl.program_id(0)
    i = pl.program_id(1)

    @pl.when(i == 0)
    def _init():
        out_ref[0, 0] = jnp.float32(0.0)

    num_classes = centers_ref.shape[0]

    labels = y_ref[...]                                              # (tile_b, 1)
    class_ids = lax.broadcasted_iota(jnp.int32, (tile_b, num_classes), 1)
    onehot = (labels == class_ids).astype(jnp.float32)               # (tile_b, C)

    # Vectorized gather on the MXU; HIGHEST keeps f32-exact selection.
    expanded = jnp.dot(
        onehot,
        centers_ref[...].astype(jnp.float32),
        preferred_element_type=jnp.float32,
        precision=lax.Precision.HIGHEST,
    )                                                                # (tile_b, D)

    d = hidden_ref[...].astype(jnp.float32) - expanded               # full-tile VPU op
    dsq = d * d

    # Row-validity mask: handles batch % tile_b != 0 and any redundant tile on
    # the short megacore split without padding `hidden` in HBM.  Out-of-range
    # rows (whatever garbage they contain) contribute exactly 0.
    block_idx = c * tiles_per_split + i                              # un-clamped
    row_ids = lax.broadcasted_iota(jnp.int32, (tile_b, 1), 0)
    valid = (block_idx * tile_b + row_ids) < batch                   # (tile_b, 1)
    dsq = jnp.where(valid, dsq, jnp.float32(0.0))

    out_ref[0, 0] += jnp.sum(dsq)                                    # one reduce per tile


def _pick_tile_b(batch, dim, num_classes, budget_bytes=16 * 1024 * 1024):
    """Largest batch tile keeping the working set well under the VMEM budget."""
    resident = 2 * num_classes * dim * 4            # centers (double-buffered)
    per_row = 4 * (4 * dim + num_classes)           # hidden x2 + temps + one-hot
    tile = max(8, (budget_bytes - resident) // max(per_row, 1))
    tile = min(tile, 1024)                          # amortize ~0.35us/step overhead
    tile = min(tile, max(8, _round_up(pl.cdiv(batch, 2), 8)))  # keep >=2 tiles if possible
    return max(8, (tile // 8) * 8)


def center_loss(y, hidden, centers, lambda_c=1.0):
    """Pallas implementation of CenterLoss.forward(y, hidden)."""
    batch, dim = hidden.shape
    num_classes = centers.shape[0]
    scale = float(lambda_c) / 2.0 / float(batch)

    hidden = hidden.astype(jnp.float32)
    centers = centers.astype(jnp.float32)
    y2d = y.astype(jnp.int32).reshape(batch, 1)

    tile_b = _pick_tile_b(batch, dim, num_classes)
    total_tiles = pl.cdiv(batch, tile_b)
    n_split = 2 if total_tiles >= 2 else 1          # feeds both TCs on v7x
    tiles_per_split = pl.cdiv(total_tiles, n_split)
    last_tile = total_tiles - 1

    def row_block(c, i):
        # Clamp so no DMA ever starts past the end of the array; redundant
        # tiles are zeroed by the in-kernel row mask.
        return (jnp.minimum(c * tiles_per_split + i, last_tile), 0)

    kernel = functools.partial(
        _center_loss_kernel,
        batch=batch, tile_b=tile_b, tiles_per_split=tiles_per_split)

    partials = pl.pallas_call(
        kernel,
        out_shape=jax.ShapeDtypeStruct((n_split, 1), jnp.float32),
        grid_spec=pltpu.PrefetchScalarGridSpec(
            num_scalar_prefetch=0,
            grid=(n_split, tiles_per_split),
            in_specs=[
                pl.BlockSpec((tile_b, 1), row_block),
                pl.BlockSpec((tile_b, dim), row_block),
                pl.BlockSpec((num_classes, dim), lambda c, i: (0, 0)),
            ],
            out_specs=pl.BlockSpec((1, 1), lambda c, i: (c, 0),
                                   memory_space=pltpu.MemorySpace.SMEM),
        ),
        compiler_params=pltpu.CompilerParams(
            dimension_semantics=("parallel", "arbitrary"),
            vmem_limit_bytes=32 * 1024 * 1024,
        ),
    )(y2d, hidden, centers)

    # sqrt and lambda_c/(2B) scale applied exactly once, outside the grid.
    total_sq = jnp.sum(partials)
    return jnp.sqrt(total_sq) * jnp.float32(scale)


def center_loss_ref(y, hidden, centers, lambda_c=1.0):
    """Pure-JAX reference (mirrors the PyTorch forward exactly)."""
    batch = hidden.shape[0]
    expanded = jnp.take(centers, y, axis=0)
    dist = jnp.sqrt(jnp.sum((hidden - expanded) ** 2))
    return lambda_c / 2.0 / batch * dist


if __name__ == "__main__":
    num_classes = 10
    dim_hidden = 32
    batch = 8
    lambda_c = 1.0

    key = jax.random.PRNGKey(0)
    k_centers, k_hidden, k_y = jax.random.split(key, 3)

    # Deterministic parameter init (matches nn.Parameter(torch.randn(C, D)) shape).
    # TODO(synk): parameter storage / .cuda() device management lives outside the kernel.
    centers = jax.random.normal(k_centers, (num_classes, dim_hidden), dtype=jnp.float32)
    hidden = jax.random.normal(k_hidden, (batch, dim_hidden), dtype=jnp.float32)
    y = jax.random.randint(k_y, (batch,), 0, num_classes, dtype=jnp.int32)

    loss = center_loss(y, hidden, centers, lambda_c=lambda_c)
    loss = jax.block_until_ready(loss)

    ref = center_loss_ref(y, hidden, centers, lambda_c=lambda_c)
    assert jnp.allclose(loss, ref, rtol=1e-5, atol=1e-5), (loss, ref)

    print("KERNEL_OK")
</pallas_src>

<mosaic_0001>
module attributes {stable_mosaic.version = 11 : i64} {
  func.func @_center_loss_kernel(%arg0: i32, %arg1: i32, %arg2: memref<8x1xi32, #tpu.memory_space<vmem>>, %arg3: memref<8x32xf32, #tpu.memory_space<vmem>>, %arg4: memref<10x32xf32, #tpu.memory_space<vmem>>, %arg5: memref<1x1xf32, #tpu.memory_space<smem>>) attributes {dimension_semantics = [#tpu.dimension_semantics<parallel>, #tpu.dimension_semantics<arbitrary>], iteration_bounds = array<i64: 1, 1>, scalar_prefetch = 0 : i64, scratch_operands = 0 : i64, tpu.core_type = #tpu.core_type<tc>, window_params = [{transform_indices = @transform_0, window_bounds = array<i64: 8, 1>}, {transform_indices = @transform_1, window_bounds = array<i64: 8, 32>}, {pipeline_mode = #tpu.pipeline_mode<synchronous>, transform_indices = @transform_2, window_bounds = array<i64: 10, 32>}, {transform_indices = @transform_3, window_bounds = array<i64: 1, 1>}]} {
    %c0_i32 = arith.constant 0 : i32
    %0 = arith.cmpi eq, %arg1, %c0_i32 : i32
    %1 = arith.extui %0 : i1 to i32
    %c0_i32_0 = arith.constant 0 : i32
    %2 = arith.cmpi ne, %1, %c0_i32_0 : i32
    scf.if %2 {
      %cst_13 = arith.constant 0.000000e+00 : f32
      %c0_14 = arith.constant 0 : index
      %c0_15 = arith.constant 0 : index
      %33 = memref.load %arg5[%c0_14, %c0_15] : memref<1x1xf32, #tpu.memory_space<smem>>
      memref.store %cst_13, %arg5[%c0_14, %c0_15] : memref<1x1xf32, #tpu.memory_space<smem>>
    } else {
    }
    %c0 = arith.constant 0 : index
    %c0_1 = arith.constant 0 : index
    %3 = vector.load %arg2[%c0, %c0_1] : memref<8x1xi32, #tpu.memory_space<vmem>>, vector<8x1xi32>
    %4 = tpu.iota {dimensions = array<i32: 1>} : vector<8x10xi32>
    %5 = vector.broadcast %3 : vector<8x1xi32> to vector<8x10xi32>
    %6 = arith.cmpi eq, %5, %4 : vector<8x10xi32>
    %7 = arith.extui %6 : vector<8x10xi1> to vector<8x10xi32>
    %8 = arith.sitofp %7 : vector<8x10xi32> to vector<8x10xf32>
    %c0_2 = arith.constant 0 : index
    %c0_3 = arith.constant 0 : index
    %9 = vector.load %arg4[%c0_2, %c0_3] : memref<10x32xf32, #tpu.memory_space<vmem>>, vector<10x32xf32>
    %cst = arith.constant dense<0.000000e+00> : vector<8x32xf32>
    %10 = tpu.matmul %8, %9, %cst {dimension_numbers = #tpu.dot_dimension_numbers<[1], [0], [0], [1], [0, 0, 1, 1], [], []>, precision = #tpu.contract_precision<fp32>} : vector<8x10xf32>, vector<10x32xf32>, vector<8x32xf32> -> vector<8x32xf32>
    %c0_4 = arith.constant 0 : index
    %c0_5 = arith.constant 0 : index
    %11 = vector.load %arg3[%c0_4, %c0_5] : memref<8x32xf32, #tpu.memory_space<vmem>>, vector<8x32xf32>
    %12 = arith.subf %11, %10 : vector<8x32xf32>
    %13 = arith.mulf %12, %12 : vector<8x32xf32>
    %c1_i32 = arith.constant 1 : i32
    %14 = arith.muli %arg0, %c1_i32 : i32
    %15 = arith.addi %14, %arg1 : i32
    %16 = tpu.iota {dimensions = array<i32: 0>} : vector<8x1xi32>
    %c8_i32 = arith.constant 8 : i32
    %17 = arith.muli %15, %c8_i32 : i32
    %18 = vector.broadcast %17 : i32 to vector<8x1xi32>
    %19 = arith.addi %18, %16 : vector<8x1xi32>
    %c8_i32_6 = arith.constant 8 : i32
    %20 = vector.broadcast %c8_i32_6 : i32 to vector<8x1xi32>
    %21 = arith.cmpi slt, %19, %20 : vector<8x1xi32>
    %cst_7 = arith.constant 0.000000e+00 : f32
    %22 = vector.shape_cast %21 : vector<8x1xi1> to vector<8x1xi1>
    %23 = vector.broadcast %22 : vector<8x1xi1> to vector<8x32xi1>
    %24 = vector.broadcast %cst_7 : f32 to vector<8x32xf32>
    %25 = arith.select %23, %13, %24 : vector<8x32xi1>, vector<8x32xf32>
    %c0_8 = arith.constant 0 : index
    %c0_9 = arith.constant 0 : index
    %26 = memref.load %arg5[%c0_8, %c0_9] : memref<1x1xf32, #tpu.memory_space<smem>>
    %27 = vector.shape_cast %25 : vector<8x32xf32> to vector<1x8x32xf32>
    %cst_10 = arith.constant dense<0.000000e+00> : vector<1xf32>
    %28 = vector.multi_reduction <add>, %27, %cst_10 [1, 2] : vector<1x8x32xf32> to vector<1xf32>
    %29 = vector.shape_cast %28 : vector<1xf32> to vector<1x1x1xf32>
    %30 = vector.extract %29[0, 0, 0] : f32 from vector<1x1x1xf32>
    %31 = arith.addf %26, %30 : f32
    %c0_11 = arith.constant 0 : index
    %c0_12 = arith.constant 0 : index
    %32 = memref.load %arg5[%c0_11, %c0_12] : memref<1x1xf32, #tpu.memory_space<smem>>
    memref.store %31, %arg5[%c0_11, %c0_12] : memref<1x1xf32, #tpu.memory_space<smem>>
    return
  }
  func.func @transform_0(%arg0: i32, %arg1: i32) -> (i32, i32) {
    %c1_i32 = arith.constant 1 : i32
    %0 = arith.muli %arg0, %c1_i32 : i32
    %1 = arith.addi %0, %arg1 : i32
    %c0_i32 = arith.constant 0 : i32
    %2 = arith.minsi %1, %c0_i32 : i32
    %c0_i32_0 = arith.constant 0 : i32
    %c0_i32_1 = arith.constant 0 : i32
    return %2, %c0_i32_0 : i32, i32
  }
  func.func @transform_1(%arg0: i32, %arg1: i32) -> (i32, i32) {
    %c1_i32 = arith.constant 1 : i32
    %0 = arith.muli %arg0, %c1_i32 : i32
    %1 = arith.addi %0, %arg1 : i32
    %c0_i32 = arith.constant 0 : i32
    %2 = arith.minsi %1, %c0_i32 : i32
    %c0_i32_0 = arith.constant 0 : i32
    %c0_i32_1 = arith.constant 0 : i32
    return %2, %c0_i32_0 : i32, i32
  }
  func.func @transform_2(%arg0: i32, %arg1: i32) -> (i32, i32) {
    %c0_i32 = arith.constant 0 : i32
    %c0_i32_0 = arith.constant 0 : i32
    %c0_i32_1 = arith.constant 0 : i32
    return %c0_i32, %c0_i32_0 : i32, i32
  }
  func.func @transform_3(%arg0: i32, %arg1: i32) -> (i32, i32) {
    %c0_i32 = arith.constant 0 : i32
    %c0_i32_0 = arith.constant 0 : i32
    return %arg0, %c0_i32 : i32, i32
  }
}

</mosaic_0001>

<bundles_post_ra>
// kernel: tpu_custom_call.1
= control target key start
LH: loop header
LB: loop body
LE: loop exit
PB: predicated region body
PF: predicated region fallthrough
CT: control target
= control target key end

     0   :  { %8 = vsyncpa [#allocation3], 0  ;;  %s777_s0 = inlined_call_operand.vmem [shape: s32[8,1], index: 0, kind: input, shape index: {}]   ;;  %s778_s1 = inlined_call_operand.vmem [shape: f32[8,32], index: 1, kind: input, shape index: {}]   ;;  %s779_s2 = inlined_call_operand.hbm [shape: f32[10,32], index: 2, kind: input, shape index: {}]   ;;  %s780_s3 = inlined_call_operand.hbm [shape: f32[1,1], index: 3, kind: output, shape index: {}]  }
   0x1   :  { %9 = vsyncpa [#allocation4], 0  ;;  %s728_s12 = smov [#allocation2]  }
   0x2   :  { %s39_s13 = sshll.u32 %s728_s12, 4  ;;  %s40_s13 = int_to_ptr.vmem [resolvable:$true] %s39_s13 }
   0x3   :  { %s704_s14 = scalar_lea.vmem %s40_s13, 256  ;;  %p709_p1 = scmp.lt.s32.totalorder %s40_s13, %s40_s13 }
   0x4   :  { %p705_p0 = scmp.ne.s32.totalorder %s40_s13, %s704_s14  ;;  %p710_p2 = scmp.lt.s32.totalorder %s704_s14, %s704_s14 }
   0x6   :  { %p711_p3 = por %p710_p2, %p709_p1 }
   0x8   :  { %p712_p4 = pnand %p711_p3, %p705_p0 }
   0xa   :  { %715 = shalt.err (!%p712_p4)
}
   0xb   :  { %s729_s15 = smov 128   ;;  %s730_s16 = smov 8  }
   0xc   :  { %45 = dma.hbm_to_vmem [thread:$0]  %s779_s2, 256, %s40_s13, [#allocation3], %s729_s15, %s729_s15, %s730_s16  }
   0xd   :  { %724 = dma.done.wait [#allocation3], 256  }
   0xe   :  { %725 = vsyncadd [#allocation3], 4294967040  ;;  %v731_v0 = vmov 0   ;;  %v732_v1 = vmov 0.0   ;;  %vm104_vm0 = vcmask 1041408   ;;  %vm733_vm1 = vmmov 0  }
   0xf   :  { %695 = vset.pattern.permute.xlu0 %v731_v0  ;;  %650 = vmatprep.subr.mxu1 %v732_v1  ;;  %v89_v2 = vld [vmem:[%s777_s0] sm:$0xff]  ;;  %v99_v3 = vld [vmem:[#allocation2 + $0x8] sm:$0x3]  ;;  %v90_v16 = vlaneseq  ;;  %vm100_vm2 = vcmask 80896   ;;  %vm581_vm4 = vcmask 261120   ;;  %s734_s22 = smov [#allocation5]  }
  0x10   :  { %643 = vmatprep.subr.mxu0 %v732_v1  ;;  %654 = vmatprep.mubr.msk.f32.mxu1 %vm733_vm1, %v732_v1  ;;  %v98_v4 = vld [vmem:[#allocation2] sm:$0xff]  ;;  %v106_v5 = vsel %vm104_vm0, %v99_v3, 0 }
  0x11   :  { %647 = vmatprep.mubr.msk.f32.mxu0 %vm733_vm1, %v732_v1  ;;  %93 = vperm.xlu0 %695, %v89_v2   ;;  %v140_v6 = vand.u32 4294901760, %v98_v4  ;;  %v137_v7 = vand.u32 4294901760, %v106_v5  ;;  %v91_v17 = vand.u32 127, %v90_v16  ;;  %v567_v41 = vld [vmem:[%s778_s1] sm:$0xff] }
  0x13   :  { %v222_v8 = vsub.f32 %v98_v4, %v140_v6  ;;  %v215_v9 = vsub.f32 %v106_v5, %v137_v7  ;;  %644 = vmatpush3.msra.mxu0 %v137_v7 }
  0x14   :  { %645 = vmatprep.subr.mxu0 %v732_v1 }
  0x15   :  { %v223_v10 = vand.u32 4294901760, %v222_v8  ;;  %v216_v11 = vand.u32 4294901760, %v215_v9  ;;  %646 = vmatpush3.msra.mxu0 %v140_v6 }
  0x16   :  { %657 = vmatprep.subr.mxu0 %v732_v1 }
  0x17   :  { %v224_v12 = vsub.f32 %v222_v8, %v223_v10  ;;  %v217_v13 = vsub.f32 %v215_v9, %v216_v11 }
  0x19   :  { %v218_v14 = vand.u32 4294901760, %v217_v13  ;;  %v225_v15 = vand.u32 4294901760, %v224_v12 }
  0x1b   :  { %651 = vmatpush3.msra.mxu1 %v218_v14 }
  0x1c   :  { %652 = vmatprep.subr.mxu1 %v732_v1 }
  0x1d   :  { %653 = vmatpush3.msra.mxu1 %v225_v15 }
  0x1e   :  { %664 = vmatprep.subr.mxu1 %v732_v1 }
  0x8c   :  { %v94_v18 = vpop.permute.xlu0 %93 }
  0x8d   :  { %vm95_vm3 = vcmp.eq.s32.totalorder %v94_v18, %v91_v17 }
  0x8e   :  { %v621_v19 = vsel %vm95_vm3, 1.0, %v732_v1 }
  0x8f   :  { %v102_v20 = vsel %vm100_vm2, %v621_v19, 0  ;;  %655 = vmatmul.mubr.msk.f32.vlgmr.msra.gmra.mxu1 %vm100_vm2, %v621_v19 }
  0x90   :  { %v176_v21 = vsub.f32 %v102_v20, %v102_v20  ;;  %665 = vmatpush3.msra.mxu1 %v137_v7  ;;  %668 = vmatprep.mubr.msk.f32.mxu1 %vm733_vm1, %v732_v1 }
  0x91   :  { %666 = vmatprep.subr.mxu1 %v732_v1 }
  0x92   :  { %667 = vmatpush3.msra.mxu1 %v140_v6  ;;  %v177_v22 = vand.u32 4294901760, %v176_v21 }
  0x93   :  { %678 = vmatprep.subr.mxu1 %v732_v1 }
  0x94   :  { %669 = vmatmul.mubr.f32.vlgmr.msra.gmra.mxu1 %v177_v22  ;;  %v178_v23 = vsub.f32 %v176_v21, %v177_v22 }
  0x95   :  { %679 = vmatpush3.msra.mxu1 %v137_v7  ;;  %682 = vmatprep.mubr.msk.f32.mxu1 %vm733_vm1, %v732_v1 }
  0x96   :  { %680 = vmatprep.subr.mxu1 %v732_v1  ;;  %v179_v24 = vand.u32 4294901760, %v178_v23 }
  0x97   :  { %681 = vmatpush3.msra.mxu1 %v140_v6 }
  0x98   :  { %648 = vmatmul.mubr.f32.vlgmr.msra.gmra.mxu0 %v179_v24  ;;  %683 = vmatmul.mubr.msk.f32.vlgmr.msra.gmra.mxu1 %vm100_vm2, %v621_v19 }
  0x99   :  { %658 = vmatpush3.msra.mxu0 %v215_v9  ;;  %661 = vmatprep.mubr.msk.f32.mxu0 %vm733_vm1, %v732_v1 }
  0x9a   :  { %659 = vmatprep.subr.mxu0 %v732_v1 }
  0x9b   :  { %660 = vmatpush3.msra.mxu0 %v222_v8 }
  0x9c   :  { %671 = vmatprep.subr.mxu0 %v732_v1  ;;  %662 = vmatmul.mubr.f32.vlgmr.msra.gmra.mxu0 %v176_v21 }
  0x9d   :  { %672 = vmatpush3.msra.mxu0 %v216_v11  ;;  %675 = vmatprep.mubr.msk.f32.mxu0 %vm733_vm1, %v732_v1 }
  0x9e   :  { %673 = vmatprep.subr.mxu0 %v732_v1 }
  0x9f   :  { %674 = vmatpush3.msra.mxu0 %v223_v10 }
  0xa0   :  { %676 = vmatmul.mubr.msk.f32.vlgmr.msra.gmra.mxu0 %vm100_vm2, %v621_v19 }
 0x14f   :  { %v262_v25 = vpop.f32.mrf.mxu1 }
 0x151   :  { %v656_v26 = vpop.f32.mrf.mxu1 }
 0x154   :  { %v413_v27 = vpop.f32.mrf.mxu1 }
 0x156   :  { %v670_v28 = vpop.f32.mrf.mxu1 }
 0x158   :  { %v181_v29 = vpop.f32.mrf.mxu0  ;;  %v563_v30 = vpop.f32.mrf.mxu1 }
 0x159   :  { %v263_v33 = vadd.f32 %v262_v25, %v181_v29 }
 0x15a   :  { %v649_v31 = vpop.f32.mrf.mxu0  ;;  %v684_v32 = vpop.f32.mrf.mxu1 }
 0x15c   :  { %v338_v34 = vpop.f32.mrf.mxu0 }
 0x15d   :  { %v339_v35 = vadd.f32 %v338_v34, %v263_v33 }
 0x15e   :  { %v663_v36 = vpop.f32.mrf.mxu0 }
 0x15f   :  { %v414_v37 = vadd.f32 %v413_v27, %v339_v35 }
 0x160   :  { %v490_v38 = vpop.f32.mrf.mxu0 }
 0x161   :  { %v491_v39 = vadd.f32 %v490_v38, %v414_v37 }
 0x162   :  { %v677_v40 = vpop.f32.mrf.mxu0 }
 0x163   :  { %v564_v42 = vadd.f32 %v563_v30, %v491_v39 }
 0x165   :  { %v568_v43 = vsub.f32 %v567_v41, %v564_v42 }
 0x167   :  { %v569_v44 = vmul.f32 %v568_v43, %v568_v43 }
 0x169   :  { %v582_v45 = vsel %vm581_vm4, %v569_v44, 0.0 }
 0x16a   :  { %583 = vadd.xlane.f32.xlu0 %v582_v45 }
 0x1f3   :  { %v584_v46 = vpop.xlane.xlu0 %583 }
 0x1f4   :  { %v585_v47 = vrot.slane %v584_v46, 4 }
 0x1f6   :  { %v586_v48 = vadd.f32 %v585_v47, %v584_v46 }
 0x1f8   :  { %v587_v49 = vrot.slane %v586_v48, 2 }
 0x1fa   :  { %v588_v50 = vadd.f32 %v587_v49, %v586_v48 }
 0x1fc   :  { %v589_v51 = vrot.slane %v588_v50, 1 }
 0x1fe   :  { %v590_v52 = vadd.f32 %v589_v51, %v588_v50 }
 0x200   :  { %685 = vpush %v590_v52 }
 0x231   :  { %s686_s21 = spop %685 }
 0x232   :  { %594 = sst [smem:[#allocation5]] %s686_s21 }
 0x233   :  { %602 = dma.smem_to_hbm %s734_s22, 16, %s780_s3, [#allocation4]  }
 0x234   :  { %726 = dma.done.wait [#allocation4], 16  }
 0x235   :  { %727 = vsyncadd [#allocation4], 4294967280 }
 0x236   :  { %606 = sfence }
 0x237   :  { %607 = vsyncpa [#allocation3], 1 }
 0x238   :  { %608 = vsyncpa [#allocation4], 1 }

</bundles_post_ra>
